<compile_context>
chip_gen: v7x
topology: tpu7x:2x2x1
jax: 0.10.0
libtpu: 0.0.40
codegen_flags: <defaults>
</compile_context>

<pallas_src>
import functools

import jax
import jax.numpy as jnp
from jax.experimental import pallas as pl
from jax.experimental.pallas import tpu as pltpu

_LANE = 128  # lane width; padded output columns


def _round_up(x, m):
    return (x + m - 1) // m * m


def _mlp_kernel(x_ref,
                w1, b1, w2, b2, w3, b3, w4, b4, w5, b5,
                o_ref):
    # Weights are bf16; accumulate in f32 on the MXU; epilogue (bias/ReLU) in f32.
    x = x_ref[...].astype(jnp.bfloat16)

    h = jnp.dot(x, w1[...], preferred_element_type=jnp.float32) + b1[...]
    h = jnp.maximum(h, 0.0)

    h = jnp.dot(h.astype(jnp.bfloat16), w2[...],
                preferred_element_type=jnp.float32) + b2[...]
    h = jnp.maximum(h, 0.0)

    h = jnp.dot(h.astype(jnp.bfloat16), w3[...],
                preferred_element_type=jnp.float32) + b3[...]
    h = jnp.maximum(h, 0.0)

    h = jnp.dot(h.astype(jnp.bfloat16), w4[...],
                preferred_element_type=jnp.float32) + b4[...]
    h = jnp.maximum(h, 0.0)

    out = jnp.dot(h.astype(jnp.bfloat16), w5[...],
                  preferred_element_type=jnp.float32) + b5[...]
    o_ref[...] = out.astype(o_ref.dtype)


def deep_nba_predictor_forward(x, params, *, block_b=512):
    """Batch-tiled fused MLP forward. Returns (B, 2) float32 logits."""
    b, f = x.shape
    n_out_pad = params[-1].shape[-1]  # lane-dense padded output width (128)

    # Batch tile: multiple of 8 (sublane alignment) for tiny batches, capped at
    # block_b (a multiple of 256 so large batches fill whole MXU passes on
    # v6e/v7x; 512*256 f32 activations stay far under the scoped VMEM limit).
    tb = min(block_b, _round_up(b, 8))
    b_pad = _round_up(b, tb)
    if b_pad != b:
        x = jnp.pad(x, ((0, b_pad - b), (0, 0)))
    grid = (b_pad // tb,)

    x_spec = pl.BlockSpec((tb, f), lambda i: (i, 0))
    out_spec = pl.BlockSpec((tb, n_out_pad), lambda i: (i, 0))
    # Full-array blocks with constant index_map: loaded once, resident in VMEM
    # across all grid steps.
    param_specs = [pl.BlockSpec(p.shape, lambda i: (0, 0)) for p in params]

    flops = 2 * b_pad * (f * 256 + 256 * 128 + 128 * 64 + 64 * 32 + 32 * n_out_pad)
    bytes_accessed = (x.size * x.dtype.itemsize
                      + sum(int(p.size) * p.dtype.itemsize for p in params)
                      + b_pad * n_out_pad * 4)

    out = pl.pallas_call(
        _mlp_kernel,
        out_shape=jax.ShapeDtypeStruct((b_pad, n_out_pad), jnp.float32),
        grid=grid,
        in_specs=[x_spec] + param_specs,
        out_specs=out_spec,
        compiler_params=pltpu.CompilerParams(
            dimension_semantics=("parallel",)),
        cost_estimate=pl.CostEstimate(
            flops=flops, transcendentals=0, bytes_accessed=bytes_accessed),
    )(x, *params)

    return out[:b, :2]


def _linear_init(key, fan_in, fan_out):
    """Deterministic PyTorch-style uniform init (bound = 1/sqrt(fan_in))."""
    kw, kb = jax.random.split(key)
    bound = 1.0 / jnp.sqrt(jnp.float32(fan_in))
    w = jax.random.uniform(kw, (fan_in, fan_out), jnp.float32, -bound, bound)
    b = jax.random.uniform(kb, (1, fan_out), jnp.float32, -bound, bound)
    return w, b


def _bn_affine(num_features, eps=1e-5):
    """Eval-mode BatchNorm1d (fresh running stats) as per-feature scale/shift."""
    gamma = jnp.ones((1, num_features), jnp.float32)
    beta = jnp.zeros((1, num_features), jnp.float32)
    running_mean = jnp.zeros((1, num_features), jnp.float32)
    running_var = jnp.ones((1, num_features), jnp.float32)
    scale = gamma / jnp.sqrt(running_var + eps)
    shift = beta - running_mean * scale
    return scale, shift


def _fold_bn_into_next(scale, shift, w_next, b_next):
    """(s*h + t) @ W + b  ==  h @ (s^T * W) + (t @ W + b)   (exact)."""
    w_folded = scale.reshape(-1, 1) * w_next
    b_folded = b_next + shift @ w_next
    return w_folded, b_folded


def make_params(input_size, key, *, n_out_pad=_LANE):
    k1, k2, k3, k4, k5 = jax.random.split(key, 5)
    w1, b1 = _linear_init(k1, input_size, 256)
    w2, b2 = _linear_init(k2, 256, 128)
    w3, b3 = _linear_init(k3, 128, 64)
    w4, b4 = _linear_init(k4, 64, 32)
    w5, b5 = _linear_init(k5, 32, 2)

    # Fold each BatchNorm1d (which follows a ReLU) into the next Linear.
    s1, t1 = _bn_affine(256)
    s2, t2 = _bn_affine(128)
    s3, t3 = _bn_affine(64)
    w2, b2 = _fold_bn_into_next(s1, t1, w2, b2)
    w3, b3 = _fold_bn_into_next(s2, t2, w3, b3)
    w4, b4 = _fold_bn_into_next(s3, t3, w4, b4)

    # Lane-dense final layer: pad output width 2 -> 128 with zero columns so the
    # kernel's stores are unmasked; wrapper slices [:, :2].
    w5 = jnp.pad(w5, ((0, 0), (0, n_out_pad - w5.shape[1])))
    b5 = jnp.pad(b5, ((0, 0), (0, n_out_pad - b5.shape[1])))

    # bf16 matmul operands (halve weight DMA bytes, ~2x MXU throughput on
    # v6e/v7x); biases stay f32 for the f32 epilogue.
    bf16 = lambda w: w.astype(jnp.bfloat16)
    return (bf16(w1), b1, bf16(w2), b2, bf16(w3), b3, bf16(w4), b4, bf16(w5), b5)


def _reference_forward(x, params):
    """Pure-JAX f32 reference for sanity checking the kernel output."""
    w1, b1, w2, b2, w3, b3, w4, b4, w5, b5 = params
    h = jnp.maximum(x @ w1.astype(jnp.float32) + b1, 0.0)
    h = jnp.maximum(h @ w2.astype(jnp.float32) + b2, 0.0)
    h = jnp.maximum(h @ w3.astype(jnp.float32) + b3, 0.0)
    h = jnp.maximum(h @ w4.astype(jnp.float32) + b4, 0.0)
    return (h @ w5.astype(jnp.float32) + b5)[:, :2]


if __name__ == "__main__":
    input_size = 32
    batch = 8

    key = jax.random.PRNGKey(0)
    kx, kp = jax.random.split(key)
    x = jax.random.normal(kx, (batch, input_size), jnp.float32)
    params = make_params(input_size, kp)

    fwd = jax.jit(functools.partial(deep_nba_predictor_forward))
    out = jax.block_until_ready(fwd(x, params))

    assert out.shape == (batch, 2), out.shape
    assert out.dtype == jnp.float32, out.dtype

    ref = _reference_forward(x, params)
    assert jnp.allclose(out, ref, rtol=1e-1, atol=1e-1), (out, ref)

    print("KERNEL_OK")
</pallas_src>

<mosaic_0001>
module attributes {stable_mosaic.version = 11 : i64} {
  func.func @_mlp_kernel(%arg0: i32, %arg1: memref<8x32xf32, #tpu.memory_space<vmem>>, %arg2: memref<32x256xbf16, #tpu.memory_space<vmem>>, %arg3: memref<1x256xf32, #tpu.memory_space<vmem>>, %arg4: memref<256x128xbf16, #tpu.memory_space<vmem>>, %arg5: memref<1x128xf32, #tpu.memory_space<vmem>>, %arg6: memref<128x64xbf16, #tpu.memory_space<vmem>>, %arg7: memref<1x64xf32, #tpu.memory_space<vmem>>, %arg8: memref<64x32xbf16, #tpu.memory_space<vmem>>, %arg9: memref<1x32xf32, #tpu.memory_space<vmem>>, %arg10: memref<32x128xbf16, #tpu.memory_space<vmem>>, %arg11: memref<1x128xf32, #tpu.memory_space<vmem>>, %arg12: memref<8x128xf32, #tpu.memory_space<vmem>>) attributes {dimension_semantics = [#tpu.dimension_semantics<parallel>], iteration_bounds = array<i64: 1>, scalar_prefetch = 0 : i64, scratch_operands = 0 : i64, tpu.core_type = #tpu.core_type<tc>, window_params = [{transform_indices = @transform_0, window_bounds = array<i64: 8, 32>}, {pipeline_mode = #tpu.pipeline_mode<synchronous>, transform_indices = @transform_1, window_bounds = array<i64: 32, 256>}, {pipeline_mode = #tpu.pipeline_mode<synchronous>, transform_indices = @transform_2, window_bounds = array<i64: 1, 256>}, {pipeline_mode = #tpu.pipeline_mode<synchronous>, transform_indices = @transform_3, window_bounds = array<i64: 256, 128>}, {pipeline_mode = #tpu.pipeline_mode<synchronous>, transform_indices = @transform_4, window_bounds = array<i64: 1, 128>}, {pipeline_mode = #tpu.pipeline_mode<synchronous>, transform_indices = @transform_5, window_bounds = array<i64: 128, 64>}, {pipeline_mode = #tpu.pipeline_mode<synchronous>, transform_indices = @transform_6, window_bounds = array<i64: 1, 64>}, {pipeline_mode = #tpu.pipeline_mode<synchronous>, transform_indices = @transform_7, window_bounds = array<i64: 64, 32>}, {pipeline_mode = #tpu.pipeline_mode<synchronous>, transform_indices = @transform_8, window_bounds = array<i64: 1, 32>}, {pipeline_mode = #tpu.pipeline_mode<synchronous>, transform_indices = @transform_9, window_bounds = array<i64: 32, 128>}, {pipeline_mode = #tpu.pipeline_mode<synchronous>, transform_indices = @transform_10, window_bounds = array<i64: 1, 128>}, {transform_indices = @transform_11, window_bounds = array<i64: 8, 128>}]} {
    %c0 = arith.constant 0 : index
    %c0_0 = arith.constant 0 : index
    %0 = vector.load %arg1[%c0, %c0_0] : memref<8x32xf32, #tpu.memory_space<vmem>>, vector<8x32xf32>
    %1 = arith.truncf %0 : vector<8x32xf32> to vector<8x32xbf16>
    %c0_1 = arith.constant 0 : index
    %c0_2 = arith.constant 0 : index
    %2 = vector.load %arg2[%c0_1, %c0_2] : memref<32x256xbf16, #tpu.memory_space<vmem>>, vector<32x256xbf16>
    %cst = arith.constant dense<0.000000e+00> : vector<8x256xf32>
    %3 = tpu.matmul %1, %2, %cst {dimension_numbers = #tpu.dot_dimension_numbers<[1], [0], [0], [1], [0, 0, 1, 1], [], []>} : vector<8x32xbf16>, vector<32x256xbf16>, vector<8x256xf32> -> vector<8x256xf32>
    %c0_3 = arith.constant 0 : index
    %c0_4 = arith.constant 0 : index
    %4 = vector.load %arg3[%c0_3, %c0_4] : memref<1x256xf32, #tpu.memory_space<vmem>>, vector<1x256xf32>
    %5 = vector.broadcast %4 : vector<1x256xf32> to vector<8x256xf32>
    %6 = arith.addf %3, %5 : vector<8x256xf32>
    %cst_5 = arith.constant 0.000000e+00 : f32
    %7 = vector.broadcast %cst_5 : f32 to vector<8x256xf32>
    %8 = arith.maximumf %6, %7 : vector<8x256xf32>
    %9 = arith.truncf %8 : vector<8x256xf32> to vector<8x256xbf16>
    %c0_6 = arith.constant 0 : index
    %c0_7 = arith.constant 0 : index
    %10 = vector.load %arg4[%c0_6, %c0_7] : memref<256x128xbf16, #tpu.memory_space<vmem>>, vector<256x128xbf16>
    %cst_8 = arith.constant dense<0.000000e+00> : vector<8x128xf32>
    %11 = tpu.matmul %9, %10, %cst_8 {dimension_numbers = #tpu.dot_dimension_numbers<[1], [0], [0], [1], [0, 0, 1, 1], [], []>} : vector<8x256xbf16>, vector<256x128xbf16>, vector<8x128xf32> -> vector<8x128xf32>
    %c0_9 = arith.constant 0 : index
    %c0_10 = arith.constant 0 : index
    %12 = vector.load %arg5[%c0_9, %c0_10] : memref<1x128xf32, #tpu.memory_space<vmem>>, vector<1x128xf32>
    %13 = vector.broadcast %12 : vector<1x128xf32> to vector<8x128xf32>
    %14 = arith.addf %11, %13 : vector<8x128xf32>
    %cst_11 = arith.constant 0.000000e+00 : f32
    %15 = vector.broadcast %cst_11 : f32 to vector<8x128xf32>
    %16 = arith.maximumf %14, %15 : vector<8x128xf32>
    %17 = arith.truncf %16 : vector<8x128xf32> to vector<8x128xbf16>
    %c0_12 = arith.constant 0 : index
    %c0_13 = arith.constant 0 : index
    %18 = vector.load %arg6[%c0_12, %c0_13] : memref<128x64xbf16, #tpu.memory_space<vmem>>, vector<128x64xbf16>
    %cst_14 = arith.constant dense<0.000000e+00> : vector<8x64xf32>
    %19 = tpu.matmul %17, %18, %cst_14 {dimension_numbers = #tpu.dot_dimension_numbers<[1], [0], [0], [1], [0, 0, 1, 1], [], []>} : vector<8x128xbf16>, vector<128x64xbf16>, vector<8x64xf32> -> vector<8x64xf32>
    %c0_15 = arith.constant 0 : index
    %c0_16 = arith.constant 0 : index
    %20 = vector.load %arg7[%c0_15, %c0_16] : memref<1x64xf32, #tpu.memory_space<vmem>>, vector<1x64xf32>
    %21 = vector.broadcast %20 : vector<1x64xf32> to vector<8x64xf32>
    %22 = arith.addf %19, %21 : vector<8x64xf32>
    %cst_17 = arith.constant 0.000000e+00 : f32
    %23 = vector.broadcast %cst_17 : f32 to vector<8x64xf32>
    %24 = arith.maximumf %22, %23 : vector<8x64xf32>
    %25 = arith.truncf %24 : vector<8x64xf32> to vector<8x64xbf16>
    %c0_18 = arith.constant 0 : index
    %c0_19 = arith.constant 0 : index
    %26 = vector.load %arg8[%c0_18, %c0_19] : memref<64x32xbf16, #tpu.memory_space<vmem>>, vector<64x32xbf16>
    %cst_20 = arith.constant dense<0.000000e+00> : vector<8x32xf32>
    %27 = tpu.matmul %25, %26, %cst_20 {dimension_numbers = #tpu.dot_dimension_numbers<[1], [0], [0], [1], [0, 0, 1, 1], [], []>} : vector<8x64xbf16>, vector<64x32xbf16>, vector<8x32xf32> -> vector<8x32xf32>
    %c0_21 = arith.constant 0 : index
    %c0_22 = arith.constant 0 : index
    %28 = vector.load %arg9[%c0_21, %c0_22] : memref<1x32xf32, #tpu.memory_space<vmem>>, vector<1x32xf32>
    %29 = vector.broadcast %28 : vector<1x32xf32> to vector<8x32xf32>
    %30 = arith.addf %27, %29 : vector<8x32xf32>
    %cst_23 = arith.constant 0.000000e+00 : f32
    %31 = vector.broadcast %cst_23 : f32 to vector<8x32xf32>
    %32 = arith.maximumf %30, %31 : vector<8x32xf32>
    %33 = arith.truncf %32 : vector<8x32xf32> to vector<8x32xbf16>
    %c0_24 = arith.constant 0 : index
    %c0_25 = arith.constant 0 : index
    %34 = vector.load %arg10[%c0_24, %c0_25] : memref<32x128xbf16, #tpu.memory_space<vmem>>, vector<32x128xbf16>
    %cst_26 = arith.constant dense<0.000000e+00> : vector<8x128xf32>
    %35 = tpu.matmul %33, %34, %cst_26 {dimension_numbers = #tpu.dot_dimension_numbers<[1], [0], [0], [1], [0, 0, 1, 1], [], []>} : vector<8x32xbf16>, vector<32x128xbf16>, vector<8x128xf32> -> vector<8x128xf32>
    %c0_27 = arith.constant 0 : index
    %c0_28 = arith.constant 0 : index
    %36 = vector.load %arg11[%c0_27, %c0_28] : memref<1x128xf32, #tpu.memory_space<vmem>>, vector<1x128xf32>
    %37 = vector.broadcast %36 : vector<1x128xf32> to vector<8x128xf32>
    %38 = arith.addf %35, %37 : vector<8x128xf32>
    %c0_29 = arith.constant 0 : index
    %c0_30 = arith.constant 0 : index
    %39 = vector.load %arg12[%c0_29, %c0_30] : memref<8x128xf32, #tpu.memory_space<vmem>>, vector<8x128xf32>
    tpu.vector_store %arg12[%c0_29, %c0_30], %38 {strides = array<i32>} : memref<8x128xf32, #tpu.memory_space<vmem>>, vector<8x128xf32>,
    return
  }
  func.func @transform_0(%arg0: i32) -> (i32, i32) {
    %c0_i32 = arith.constant 0 : i32
    %c0_i32_0 = arith.constant 0 : i32
    return %arg0, %c0_i32 : i32, i32
  }
  func.func @transform_1(%arg0: i32) -> (i32, i32) {
    %c0_i32 = arith.constant 0 : i32
    %c0_i32_0 = arith.constant 0 : i32
    %c0_i32_1 = arith.constant 0 : i32
    return %c0_i32, %c0_i32_0 : i32, i32
  }
  func.func @transform_2(%arg0: i32) -> (i32, i32) {
    %c0_i32 = arith.constant 0 : i32
    %c0_i32_0 = arith.constant 0 : i32
    %c0_i32_1 = arith.constant 0 : i32
    return %c0_i32, %c0_i32_0 : i32, i32
  }
  func.func @transform_3(%arg0: i32) -> (i32, i32) {
    %c0_i32 = arith.constant 0 : i32
    %c0_i32_0 = arith.constant 0 : i32
    %c0_i32_1 = arith.constant 0 : i32
    return %c0_i32, %c0_i32_0 : i32, i32
  }
  func.func @transform_4(%arg0: i32) -> (i32, i32) {
    %c0_i32 = arith.constant 0 : i32
    %c0_i32_0 = arith.constant 0 : i32
    %c0_i32_1 = arith.constant 0 : i32
    return %c0_i32, %c0_i32_0 : i32, i32
  }
  func.func @transform_5(%arg0: i32) -> (i32, i32) {
    %c0_i32 = arith.constant 0 : i32
    %c0_i32_0 = arith.constant 0 : i32
    %c0_i32_1 = arith.constant 0 : i32
    return %c0_i32, %c0_i32_0 : i32, i32
  }
  func.func @transform_6(%arg0: i32) -> (i32, i32) {
    %c0_i32 = arith.constant 0 : i32
    %c0_i32_0 = arith.constant 0 : i32
    %c0_i32_1 = arith.constant 0 : i32
    return %c0_i32, %c0_i32_0 : i32, i32
  }
  func.func @transform_7(%arg0: i32) -> (i32, i32) {
    %c0_i32 = arith.constant 0 : i32
    %c0_i32_0 = arith.constant 0 : i32
    %c0_i32_1 = arith.constant 0 : i32
    return %c0_i32, %c0_i32_0 : i32, i32
  }
  func.func @transform_8(%arg0: i32) -> (i32, i32) {
    %c0_i32 = arith.constant 0 : i32
    %c0_i32_0 = arith.constant 0 : i32
    %c0_i32_1 = arith.constant 0 : i32
    return %c0_i32, %c0_i32_0 : i32, i32
  }
  func.func @transform_9(%arg0: i32) -> (i32, i32) {
    %c0_i32 = arith.constant 0 : i32
    %c0_i32_0 = arith.constant 0 : i32
    %c0_i32_1 = arith.constant 0 : i32
    return %c0_i32, %c0_i32_0 : i32, i32
  }
  func.func @transform_10(%arg0: i32) -> (i32, i32) {
    %c0_i32 = arith.constant 0 : i32
    %c0_i32_0 = arith.constant 0 : i32
    %c0_i32_1 = arith.constant 0 : i32
    return %c0_i32, %c0_i32_0 : i32, i32
  }
  func.func @transform_11(%arg0: i32) -> (i32, i32) {
    %c0_i32 = arith.constant 0 : i32
    %c0_i32_0 = arith.constant 0 : i32
    return %arg0, %c0_i32 : i32, i32
  }
}

</mosaic_0001>

<bundles_post_ra>
// kernel: deep_nba_predictor_forward.1
= control target key start
LH: loop header
LB: loop body
LE: loop exit
PB: predicated region body
PF: predicated region fallthrough
CT: control target
= control target key end

     0   :  { %16 = vsyncpa [#allocation3], 0  ;;  %s1168_s0 = inlined_call_operand.hbm [shape: f32[8,32], index: 0, kind: input, shape index: {}]   ;;  %s1169_s1 = inlined_call_operand.hbm [shape: bf16[32,256], index: 1, kind: input, shape index: {}]   ;;  %s1170_s2 = inlined_call_operand.vmem [shape: f32[1,256], index: 2, kind: input, shape index: {}]   ;;  %s1171_s3 = inlined_call_operand.vmem [shape: bf16[256,128], index: 3, kind: input, shape index: {}]   ;;  %s1172_s4 = inlined_call_operand.hbm [shape: f32[1,128], index: 4, kind: input, shape index: {}]   ;;  %s1173_s5 = inlined_call_operand.vmem [shape: bf16[128,64], index: 5, kind: input, shape index: {}]   ;;  %s1174_s6 = inlined_call_operand.hbm [shape: f32[1,64], index: 6, kind: input, shape index: {}]   ;;  %s1175_s7 = inlined_call_operand.vmem [shape: bf16[64,32], index: 7, kind: input, shape index: {}]   ;;  %s1176_s8 = inlined_call_operand.hbm [shape: f32[1,32], index: 8, kind: input, shape index: {}]   ;;  %s1177_s9 = inlined_call_operand.vmem [shape: bf16[32,128], index: 9, kind: input, shape index: {}]   ;;  %s1178_s10 = inlined_call_operand.vmem [shape: f32[1,128], index: 10, kind: input, shape index: {}]   ;;  %s1179_s11 = inlined_call_operand.vmem [shape: f32[8,128], index: 11, kind: output, shape index: {}]  }
   0x1   :  { %17 = vsyncpa [#allocation5], 0 }
   0x2   :  { %18 = vsyncpa [#allocation8], 0  ;;  %s917_s17 = smov [#allocation4]   ;;  %s801_s21 = scalar_lea.hbm %s1169_s1, 512 }
   0x3   :  { %s34_s18 = sshll.u32 %s917_s17, 4  ;;  %p802_p0 = scmp.ne.s32.totalorder %s1169_s1, %s801_s21  ;;  %s35_s18 = int_to_ptr.vmem [resolvable:$true] %s34_s18 }
   0x4   :  { %p805_p1 = scmp.lt.u32.totalorder %s801_s21, %s1169_s1 }
   0x6   :  { %p807_p2 = pnand %p805_p1, %p802_p0 }
   0x8   :  { %810 = shalt.err (!%p807_p2)
}
   0x9   :  { %s811_s26 = scalar_lea.vmem %s35_s18, 512  ;;  %p816_p4 = scmp.lt.s32.totalorder %s35_s18, %s35_s18 }
   0xa   :  { %p812_p3 = scmp.ne.s32.totalorder %s35_s18, %s811_s26  ;;  %p817_p5 = scmp.lt.s32.totalorder %s811_s26, %s811_s26 }
   0xc   :  { %p818_p6 = por %p817_p5, %p816_p4 }
   0xe   :  { %p819_p7 = pnand %p818_p6, %p812_p3 }
  0x10   :  { %822 = shalt.err (!%p819_p7)
}
  0x11   :  { %s918_s27 = smov 128   ;;  %s919_s28 = smov 8  }
  0x12   :  { %40 = dma.hbm_to_vmem [thread:$0]  %s1169_s1, 512, %s35_s18, [#allocation5], %s918_s27, %s918_s27, %s919_s28  }
  0x13   :  { %s920_s12 = smov [#allocation7]   ;;  %s921_s14 = smov [#allocation2]  }
  0x14   :  { %s63_s13 = sshll.u32 %s920_s12, 4  ;;  %s25_s15 = sshll.u32 %s921_s14, 4  ;;  %s64_s13 = int_to_ptr.vmem [resolvable:$true] %s63_s13  ;;  %s26_s15 = int_to_ptr.vmem [resolvable:$true] %s25_s15 }
  0x15   :  { %s823_s19 = scalar_lea.hbm %s1174_s6, 16 }
  0x16   :  { %p824_p8 = scmp.ne.s32.totalorder %s1174_s6, %s823_s19  ;;  %p827_p9 = scmp.lt.u32.totalorder %s823_s19, %s1174_s6 }
  0x18   :  { %p829_p10 = pnand %p827_p9, %p824_p8 }
  0x1a   :  { %832 = shalt.err (!%p829_p10)
}
  0x1b   :  { %s833_s1 = scalar_lea.vmem %s64_s13, 16  ;;  %s837_s18 = scalar_lea.vmem %s64_s13, 32 }
  0x1c   :  { %p834_p11 = scmp.ne.s32.totalorder %s64_s13, %s833_s1  ;;  %p838_p12 = scmp.lt.s32.totalorder %s64_s13, %s64_s13 }
  0x1d   :  { %p839_p13 = scmp.lt.s32.totalorder %s837_s18, %s833_s1 }
  0x1f   :  { %p840_p0 = por %p839_p13, %p838_p12 }
  0x21   :  { %p841_p1 = pnand %p840_p0, %p834_p11 }
  0x23   :  { %844 = shalt.err (!%p841_p1)
}
  0x24   :  { %66 = dma.hbm_to_vmem [thread:$0]  %s1174_s6, 16, %s64_s13, [#allocation8]  }
  0x25   :  { %s845_s28 = scalar_lea.hbm %s1168_s0, 128 }
  0x26   :  { %p846_p2 = scmp.ne.s32.totalorder %s1168_s0, %s845_s28  ;;  %p849_p3 = scmp.lt.u32.totalorder %s845_s28, %s1168_s0 }
  0x28   :  { %p851_p4 = pnand %p849_p3, %p846_p2 }
  0x2a   :  { %854 = shalt.err (!%p851_p4)
}
  0x2b   :  { %s855_s16 = scalar_lea.vmem %s26_s15, 128  ;;  %p860_p6 = scmp.lt.s32.totalorder %s26_s15, %s26_s15 }
  0x2c   :  { %p856_p5 = scmp.ne.s32.totalorder %s26_s15, %s855_s16  ;;  %p861_p7 = scmp.lt.s32.totalorder %s855_s16, %s855_s16 }
  0x2e   :  { %p862_p8 = por %p861_p7, %p860_p6 }
  0x30   :  { %p863_p9 = pnand %p862_p8, %p856_p5 }
  0x32   :  { %866 = shalt.err (!%p863_p9)
}
  0x33   :  { %28 = dma.hbm_to_vmem [thread:$0]  %s1168_s0, 128, %s26_s15, [#allocation3]  }
  0x34   :  { %s922_s17 = smov [#allocation6]   ;;  %s923_s20 = smov [#allocation9]  }
  0x35   :  { %s51_s19 = sshll.u32 %s922_s17, 4  ;;  %s75_s21 = sshll.u32 %s923_s20, 4  ;;  %s52_s19 = int_to_ptr.vmem [resolvable:$true] %s51_s19  ;;  %s76_s21 = int_to_ptr.vmem [resolvable:$true] %s75_s21 }
  0x36   :  { %s867_s1 = scalar_lea.hbm %s1172_s4, 16 }
  0x37   :  { %p868_p10 = scmp.ne.s32.totalorder %s1172_s4, %s867_s1  ;;  %p871_p11 = scmp.lt.u32.totalorder %s867_s1, %s1172_s4 }
  0x39   :  { %p873_p12 = pnand %p871_p11, %p868_p10 }
  0x3b   :  { %876 = shalt.err (!%p873_p12)
}
  0x3c   :  { %s877_s0 = scalar_lea.vmem %s52_s19, 16  ;;  %s881_s15 = scalar_lea.vmem %s52_s19, 32 }
  0x3d   :  { %p878_p13 = scmp.ne.s32.totalorder %s52_s19, %s877_s0  ;;  %p882_p0 = scmp.lt.s32.totalorder %s52_s19, %s52_s19 }
  0x3e   :  { %p883_p1 = scmp.lt.s32.totalorder %s881_s15, %s877_s0 }
  0x40   :  { %p884_p2 = por %p883_p1, %p882_p0 }
  0x42   :  { %p885_p3 = pnand %p884_p2, %p878_p13 }
  0x44   :  { %888 = shalt.err (!%p885_p3)
}
  0x45   :  { %54 = dma.hbm_to_vmem [thread:$0]  %s1172_s4, 16, %s52_s19, [#allocation5]  }
  0x46   :  { %s889_s12 = scalar_lea.hbm %s1176_s8, 16 }
  0x47   :  { %p890_p4 = scmp.ne.s32.totalorder %s1176_s8, %s889_s12  ;;  %p893_p5 = scmp.lt.u32.totalorder %s889_s12, %s1176_s8 }
  0x49   :  { %p895_p6 = pnand %p893_p5, %p890_p4 }
  0x4b   :  { %898 = shalt.err (!%p895_p6)
}
  0x4c   :  { %s899_s17 = scalar_lea.vmem %s76_s21, 16  ;;  %s903_s20 = scalar_lea.vmem %s76_s21, 32 }
  0x4d   :  { %p900_p7 = scmp.ne.s32.totalorder %s76_s21, %s899_s17  ;;  %p904_p8 = scmp.lt.s32.totalorder %s76_s21, %s76_s21 }
  0x4e   :  { %p905_p9 = scmp.lt.s32.totalorder %s903_s20, %s899_s17 }
  0x50   :  { %p906_p10 = por %p905_p9, %p904_p8 }
  0x52   :  { %p907_p11 = pnand %p906_p10, %p900_p7 }
  0x54   :  { %910 = shalt.err (!%p907_p11)
}
  0x55   :  { %78 = dma.hbm_to_vmem [thread:$0]  %s1176_s8, 16, %s76_s21, [#allocation8]  }
  0x56   :  { %911 = dma.done.wait [#allocation3], 128  }
  0x57   :  { %912 = vsyncadd [#allocation3], 4294967168 }
  0x58   :  { %913 = dma.done.wait [#allocation5], 528  }
  0x59   :  { %914 = vsyncadd [#allocation5], 4294966768 }
  0x5a   :  { %915 = dma.done.wait [#allocation8], 32  }
  0x5b   :  { %916 = vsyncadd [#allocation8], 4294967264  ;;  %v924_v0 = vmov 0   ;;  %v765_v1 = vld [vmem:[#allocation4 + $0x4] ss:$8 sps:$4 sm:$0xff]   ;;  %v99_v5 = vld [vmem:[#allocation2] sm:$0xff]  ;;  %v107_v30 = vlaneseq }
  0x5c   :  { %173 = vmatprep.mubr.bf16.mxu0 %v924_v0  ;;  %v767_v2 = vld [vmem:[#allocation4] ss:$8 sps:$4 sm:$0xff]   ;;  %141 = vmatprep.subr.bf16.mxu0 %v765_v1  ;;  %v768_v3 = vld [vmem:[#allocation4 + $0x14] ss:$8 sps:$4 sm:$0xff]   ;;  %v770_v4 = vld [vmem:[#allocation4 + $0x10] ss:$8 sps:$4 sm:$0xff]   ;;  %v100_v9 = vpack.c.bf16 %v99_v5, %v99_v5 }
  0x5d   :  { %142 = vmatpush1.bf16.msra.mxu0 %v767_v2  ;;  %v771_v6 = vld [vmem:[%s1171_s3 + $0x40] sm:$0xff]   ;;  %v773_v8 = vld [vmem:[%s1171_s3 + $0x48] sm:$0xff]   ;;  %vm137_vm0 = vcmask 261120   ;;  %v775_v11 = vld [vmem:[%s1171_s3 + $0x50] sm:$0xff]   ;;  %v925_v24 = vmov 0.0   ;;  %v108_v31 = vshrl.u32 %v107_v30, 7 }
  0x5e   :  { %143 = vmatprep.subr.bf16.mxu0 %v768_v3  ;;  %v772_v7 = vld [vmem:[%s1171_s3] sm:$0xff]   ;;  %676 = vmatprep.subr.bf16.mxu1 %v771_v6  ;;  %v774_v10 = vld [vmem:[%s1171_s3 + $0x8] sm:$0xff]   ;;  %v776_v12 = vld [vmem:[%s1171_s3 + $0x10] sm:$0xff]   ;;  %vm926_vm1 = vmmov 0   ;;  %vm515_vm2 = vcmask 523264  }
  0x5f   :  { %677 = vmatpush3.bf16.msra.mxu1 %v772_v7  ;;  %v777_v13 = vld [vmem:[%s1171_s3 + $0x58] sm:$0xff]   ;;  %v779_v15 = vld [vmem:[%s1171_s3 + $0x60] sm:$0xff]   ;;  %v781_v17 = vld [vmem:[%s1171_s3 + $0x68] sm:$0xff]   ;;  %v109_v32 = vsub.s32 0, %v108_v31  ;;  %v113_v34 = vsub.s32 1, %v108_v31 }
  0x60   :  { %678 = vmatprep.subr.bf16.mxu1 %v773_v8  ;;  %v778_v14 = vld [vmem:[%s1171_s3 + $0x18] sm:$0xff]   ;;  %v780_v16 = vld [vmem:[%s1171_s3 + $0x20] sm:$0xff]   ;;  %v782_v18 = vld [vmem:[%s1171_s3 + $0x28] sm:$0xff]  }
  0x61   :  { %144 = vmatpush1.bf16.msra.mxu0 %v770_v4  ;;  %v783_v19 = vld [vmem:[%s1171_s3 + $0x70] sm:$0xff]   ;;  %v785_v21 = vld [vmem:[%s1171_s3 + $0x78] sm:$0xff]   ;;  %v787_v23 = vld [vmem:[%s1173_s5] sm:$0xff]  }
  0x62   :  { %v784_v20 = vld [vmem:[%s1171_s3 + $0x30] sm:$0xff]   ;;  %v786_v22 = vld [vmem:[%s1171_s3 + $0x38] sm:$0xff]   ;;  %715 = vmatprep.subr.bf16.mxu0 %v925_v24  ;;  %v788_v25 = vld [vmem:[%s1173_s5 + $0x8] sm:$0xff]  }
  0x63   :  { %679 = vmatpush3.bf16.msra.mxu1 %v774_v10  ;;  %v789_v26 = vld [vmem:[%s1173_s5 + $0x10] sm:$0xff]   ;;  %v790_v27 = vld [vmem:[%s1173_s5 + $0x18] sm:$0xff]   ;;  %v791_v28 = vld [vmem:[%s1173_s5 + $0x20] sm:$0xff]  }
  0x64   :  { %639 = vmatmul.mubr.msk.bf16.vlgmr.msra.gmra.mrb[0].mxu0 %vm137_vm0, %v100_v9  ;;  %680 = vmatprep.subr.bf16.mxu1 %v775_v11  ;;  %v792_v29 = vld [vmem:[%s1173_s5 + $0x28] sm:$0xff]   ;;  %v105_v33 = vld [vmem:[%s1170_s2] sm:$0x3]  ;;  %v793_v47 = vld [vmem:[%s1173_s5 + $0x30] sm:$0xff]  }
  0x65   :  { %716 = vmatpush3.bf16.msra.mxu0 %v787_v23  ;;  %v110_v35 = vrot.slane %v105_v33, %v109_v32  ;;  %v114_v36 = vrot.slane %v105_v33, %v113_v34  ;;  %v794_v48 = vld [vmem:[%s1173_s5 + $0x38] sm:$0xff]   ;;  %731 = vmatprep.mubr.msk.bf16.mxu0 %vm926_vm1, %v925_v24  ;;  %v795_v49 = vld [vmem:[%s1175_s7] sm:$0xff]   ;;  %v796_v50 = vld [vmem:[%s1175_s7 + $0x8] sm:$0xff]  }
  0x66   :  { %717 = vmatprep.subr.bf16.mxu0 %v925_v24  ;;  %v640_v52 = vld [vmem:[#allocation6] ss:$0 sm:$0xff]  ;;  %v797_v60 = vld [vmem:[%s1175_s7 + $0x10] sm:$0xff]   ;;  %v798_v61 = vld [vmem:[%s1175_s7 + $0x18] sm:$0xff]  }
  0x67   :  { %681 = vmatpush3.bf16.msra.mxu1 %v776_v12  ;;  %v799_v62 = vld [vmem:[%s1177_s9] sm:$0xff]   ;;  %v657_v63 = vld [vmem:[#allocation7] ss:$0 sm:$0xff]  ;;  %v666_v8 = vld [vmem:[#allocation9] ss:$0 sm:$0xff] }
  0x68   :  { %682 = vmatprep.subr.bf16.mxu1 %v777_v13  ;;  %v800_v7 = vld [vmem:[%s1177_s9 + $0x8] sm:$0xff]  }
  0x69   :  { %718 = vmatpush3.bf16.msra.mxu0 %v788_v25 }
  0x6a   :  { %719 = vmatprep.subr.bf16.mxu0 %v925_v24 }
  0x6b   :  { %683 = vmatpush3.bf16.msra.mxu1 %v778_v14 }
  0x6c   :  { %684 = vmatprep.subr.bf16.mxu1 %v779_v15 }
  0x6d   :  { %720 = vmatpush3.bf16.msra.mxu0 %v789_v26 }
  0x6e   :  { %721 = vmatprep.subr.bf16.mxu0 %v925_v24 }
  0x6f   :  { %685 = vmatpush3.bf16.msra.mxu1 %v780_v16  ;;  %v672_v16 = vld [vmem:[%s1178_s10] ss:$0 sm:$0xff] }
  0x70   :  { %686 = vmatprep.subr.bf16.mxu1 %v781_v17 }
  0x71   :  { %722 = vmatpush3.bf16.msra.mxu0 %v790_v27 }
  0x72   :  { %723 = vmatprep.subr.bf16.mxu0 %v925_v24 }
  0x73   :  { %687 = vmatpush3.bf16.msra.mxu1 %v782_v18 }
  0x74   :  { %688 = vmatprep.subr.bf16.mxu1 %v783_v19 }
  0x75   :  { %724 = vmatpush3.bf16.msra.mxu0 %v791_v28 }
  0x76   :  { %725 = vmatprep.subr.bf16.mxu0 %v925_v24 }
  0x77   :  { %689 = vmatpush3.bf16.msra.mxu1 %v784_v20 }
  0x78   :  { %690 = vmatprep.subr.bf16.mxu1 %v785_v21 }
  0x79   :  { %726 = vmatpush3.bf16.msra.mxu0 %v792_v29 }
  0x7a   :  { %727 = vmatprep.subr.bf16.mxu0 %v925_v24 }
  0x7b   :  { %691 = vmatpush3.bf16.msra.mxu1 %v786_v22 }
  0x7c   :  { %735 = vmatprep.subr.bf16.mxu1 %v925_v24 }
  0x7d   :  { %728 = vmatpush3.bf16.msra.mxu0 %v793_v47 }
  0x7e   :  { %729 = vmatprep.subr.bf16.mxu0 %v925_v24 }
  0x81   :  { %730 = vmatpush3.bf16.msra.mxu0 %v794_v48 }
  0x82   :  { %747 = vmatprep.subr.bf16.mxu0 %v925_v24 }
 0x137   :  { %v175_v37 = vpop.f32.mrb[0].mxu0 }
 0x138   :  { %v176_v38 = vadd.f32 %v175_v37, %v110_v35  ;;  %v177_v39 = vpop.f32.mrb[1].mxu0 }
 0x139   :  { %v178_v40 = vadd.f32 %v177_v39, %v114_v36  ;;  %v179_v41 = vpop.f32.mrb[2].mxu0 }
 0x13a   :  { %v182_v42 = vmax.f32 %v176_v38, 0.0  ;;  %v180_v43 = vpop.f32.mrb[3].mxu0 }
 0x13b   :  { %v183_v44 = vmax.f32 %v178_v40, 0.0 }
 0x13c   :  { %v184_v46 = vpack.c.bf16 %v182_v42, %v182_v42 }
 0x13d   :  { %v185_v45 = vpack.c.bf16 %v183_v44, %v183_v44 }
 0x13f   :  { %353 = vmatprep.mubr.bf16.mxu1 %v185_v45 }
 0x140   :  { %354 = vmatmul.mubr.bf16.vlgmr.msra.gmra.mrb[0].mxu1 %v184_v46 }
 0x141   :  { %743 = vmatprep.mubr.msk.bf16.mxu1 %vm926_vm1, %v925_v24  ;;  %736 = vmatpush3.bf16.msra.mxu1 %v795_v49 }
 0x142   :  { %737 = vmatprep.subr.bf16.mxu1 %v925_v24 }
 0x145   :  { %738 = vmatpush3.bf16.msra.mxu1 %v796_v50 }
 0x146   :  { %739 = vmatprep.subr.bf16.mxu1 %v925_v24 }
 0x149   :  { %740 = vmatpush3.bf16.msra.mxu1 %v797_v60 }
 0x14a   :  { %741 = vmatprep.subr.bf16.mxu1 %v925_v24 }
 0x14d   :  { %742 = vmatpush3.bf16.msra.mxu1 %v798_v61 }
 0x213   :  { %v692_v51 = vpop.f32.mrb[0].mxu1 }
 0x214   :  { %v693_v53 = vpop.f32.mrb[1].mxu1 }
 0x215   :  { %v694_v54 = vadd.f32 %v693_v53, %v692_v51  ;;  %v695_v55 = vpop.f32.mrb[2].mxu1 }
 0x216   :  { %v696_v56 = vpop.f32.mrb[3].mxu1 }
 0x217   :  { %v356_v57 = vadd.f32 %v694_v54, %v640_v52 }
 0x219   :  { %v361_v58 = vmax.f32 %v356_v57, 0.0 }
 0x21b   :  { %v362_v59 = vpack.c.bf16 %v361_v58, %v361_v58 }
 0x21d   :  { %732 = vmatmul.mubr.bf16.vlgmr.msra.gmra.mrb[4].mxu0 %v362_v59 }
 0x21e   :  { %751 = vmatprep.mubr.msk.bf16.mxu0 %vm926_vm1, %v925_v24  ;;  %748 = vmatpush3.bf16.msra.mxu0 %v799_v62 }
 0x21f   :  { %749 = vmatprep.subr.bf16.mxu0 %v925_v24 }
 0x222   :  { %750 = vmatpush3.bf16.msra.mxu0 %v800_v7 }
 0x2f0   :  { %v468_v0 = vpop.f32.mrb[4].mxu0 }
 0x2f1   :  { %v469_v1 = vadd.f32 %v657_v63, %v468_v0  ;;  %v733_v2 = vpop.f32.mrb[5].mxu0 }
 0x2f2   :  { %v471_v3 = vpop.f32.mrb[6].mxu0 }
 0x2f3   :  { %v474_v4 = vmax.f32 %v469_v1, 0.0  ;;  %v734_v5 = vpop.f32.mrb[7].mxu0 }
 0x2f5   :  { %v475_v6 = vpack.c.bf16 %v474_v4, %v474_v4 }
 0x2f7   :  { %744 = vmatmul.mubr.msk.bf16.vlgmr.msra.gmra.mrb[4].mxu1 %vm515_vm2, %v475_v6 }
 0x3ca   :  { %v553_v9 = vpop.f32.mrb[4].mxu1 }
 0x3cb   :  { %v554_v10 = vadd.f32 %v666_v8, %v553_v9  ;;  %v745_v11 = vpop.f32.mrb[5].mxu1 }
 0x3cc   :  { %v556_v12 = vpop.f32.mrb[6].mxu1 }
 0x3cd   :  { %v559_v13 = vmax.f32 %v554_v10, 0.0  ;;  %v746_v14 = vpop.f32.mrb[7].mxu1 }
 0x3cf   :  { %v560_v15 = vpack.c.bf16 %v559_v13, %v559_v13 }
 0x3d1   :  { %752 = vmatmul.mubr.msk.bf16.vlgmr.msra.gmra.mrb[8].mxu0 %vm137_vm0, %v560_v15 }
 0x4a4   :  { %v621_v17 = vpop.f32.mrb[8].mxu0 }
 0x4a5   :  { %v622_v18 = vadd.f32 %v672_v16, %v621_v17  ;;  %v753_v19 = vpop.f32.mrb[9].mxu0 }
 0x4a6   :  { %v624_v20 = vpop.f32.mrb[10].mxu0 }
 0x4a7   :  { %627 = vst [vmem:[%s1179_s11] sm:$0xff] %v622_v18  ;;  %v754_v21 = vpop.f32.mrb[11].mxu0 }
 0x4a8   :  { %632 = vsyncpa [#allocation3], 1 }
 0x4a9   :  { %633 = vsyncpa [#allocation5], 1 }
 0x4aa   :  { %634 = vsyncpa [#allocation8], 1 }

</bundles_post_ra>
